<compile_context>
chip_gen: v5e
topology: v5e:2x2
jax: 0.10.0
libtpu: 0.0.40
codegen_flags: <defaults>
</compile_context>

<pallas_src>
import functools

import jax
import jax.numpy as jnp
from jax.experimental import pallas as pl
from jax.experimental.pallas import tpu as pltpu

LANE = 128
TILE_ALIGN = 256  # MXU-friendly M-tile alignment (2x256 MXU on v6e/v7x; ok on v5e)


def _netgirl_kernel(x_ref, w1_ref, b1_ref, w2_ref, b2_ref, o_ref, *, bf16_epilogue):
    # Cast x to bf16 on the VPU (hidden under DMA/MXU); accumulate f32 on the MXU.
    x = x_ref[...].astype(jnp.bfloat16)
    h = jnp.dot(x, w1_ref[...], preferred_element_type=jnp.float32)
    h = h + b1_ref[...]                       # f32 bias add
    if bf16_epilogue:
        # v6e/v7x: bf16 VPU/EUP path; h is truncated to bf16 for the 2nd matmul anyway.
        h = jnp.tanh(h.astype(jnp.bfloat16))
    else:
        # v4/v5e: no bf16 vector path; tanh in f32, cast only for the MXU.
        h = jnp.tanh(h).astype(jnp.bfloat16)
    y = jnp.dot(h, w2_ref[...], preferred_element_type=jnp.float32)
    o_ref[...] = jnp.tanh(y + b2_ref[...])    # f32 store, true out_dim (masked if <128)


def netgirl_forward(x, w1, b1, w2, b2, *, block_batch=512):
    """x: [B, in_dim] f32; w1: [in_dim, H]; b1: [H]/[1,H]; w2: [H, O]; b2: [O]/[1,O]."""
    x = jnp.asarray(x, jnp.float32)
    batch, in_dim = x.shape
    hidden = w1.shape[1]
    out_dim = w2.shape[1]

    b1 = jnp.asarray(b1, jnp.float32).reshape(1, hidden)
    b2 = jnp.asarray(b2, jnp.float32).reshape(1, out_dim)

    # --- one-time weight prep (small, stays VMEM-resident; x itself untouched) ---
    # Pad hidden to a 128-lane multiple so h and the 2nd matmul's K are lane-dense.
    hidden_p = max(LANE, pl.cdiv(hidden, LANE) * LANE)
    w1p = jnp.zeros((in_dim, hidden_p), jnp.float32).at[:, :hidden].set(w1)
    b1p = jnp.zeros((1, hidden_p), jnp.float32).at[:, :hidden].set(b1)
    w2p = jnp.zeros((hidden_p, out_dim), jnp.float32).at[:hidden, :].set(w2)
    w1_bf = w1p.astype(jnp.bfloat16)
    w2_bf = w2p.astype(jnp.bfloat16)

    # --- batch tiling: no wrapper-side pad of x ---------------------------------
    if batch <= block_batch:
        tb = batch                                   # single full-dim block (always legal)
    else:
        tb = max(TILE_ALIGN, (block_batch // TILE_ALIGN) * TILE_ALIGN)
    grid = (pl.cdiv(batch, tb),)                     # ragged tail handled by masked stores

    # bf16 VPU/EUP epilogue only on chips that have it (v6e / v7x).
    kind = jax.devices()[0].device_kind.lower()
    bf16_epilogue = not any(t in kind for t in ("v2", "v3", "v4", "v5"))
    kernel = functools.partial(_netgirl_kernel, bf16_epilogue=bf16_epilogue)

    cost = pl.CostEstimate(
        flops=2 * batch * (in_dim * hidden_p + hidden_p * out_dim),
        transcendentals=batch * (hidden_p + out_dim),
        bytes_accessed=(x.size * 4 + w1_bf.size * 2 + w2_bf.size * 2
                        + b1p.size * 4 + b2.size * 4 + batch * out_dim * 4),
    )

    def run(single_buffer_weights):
        def resident(shape):
            if single_buffer_weights:
                return pl.BlockSpec(shape, lambda i: (0, 0),
                                    pipeline_mode=pl.Buffered(1))
            return pl.BlockSpec(shape, lambda i: (0, 0))

        # Explicit VMEM budget: resident weights (+biases), double-buffered x/out
        # tiles, working set for h, plus headroom; clamp to 64 MiB (safe on v7x).
        nbuf = 1 if single_buffer_weights else 2
        weight_bytes = w1_bf.size * 2 + w2_bf.size * 2 + b1p.size * 4 + b2.size * 4
        tile_bytes = 2 * tb * in_dim * 4 + 2 * tb * out_dim * 4
        work_bytes = 4 * tb * hidden_p * 4
        vmem_limit = nbuf * weight_bytes + tile_bytes + work_bytes + (8 << 20)
        vmem_limit = int(min(max(vmem_limit, 32 << 20), 64 << 20))

        out = pl.pallas_call(
            kernel,
            out_shape=jax.ShapeDtypeStruct((batch, out_dim), jnp.float32),
            grid=grid,
            in_specs=[
                pl.BlockSpec((tb, in_dim), lambda i: (i, 0)),   # pipelined f32 x tile
                resident((in_dim, hidden_p)),                   # resident bf16 w1
                resident((1, hidden_p)),                        # resident f32 b1
                resident((hidden_p, out_dim)),                  # resident bf16 w2
                resident((1, out_dim)),                         # resident f32 b2
            ],
            out_specs=pl.BlockSpec((tb, out_dim), lambda i: (i, 0)),
            compiler_params=pltpu.CompilerParams(
                dimension_semantics=("parallel",),              # batch tiles independent
                vmem_limit_bytes=vmem_limit,
            ),
            cost_estimate=cost,
        )(x, w1_bf, b1p, w2_bf, b2)
        return jax.block_until_ready(out)

    try:
        return run(single_buffer_weights=True)
    except Exception:
        # pipeline_mode=pl.Buffered(1) unsupported on this JAX/Mosaic -> default buffering.
        return run(single_buffer_weights=False)


def init_netgirl_params(key, input_dim, num_hidden, output_dim):
    """Deterministic init mimicking nn.Linear's U(-1/sqrt(fan_in), 1/sqrt(fan_in))."""
    k1, k2, k3, k4 = jax.random.split(key, 4)
    bound1 = 1.0 / jnp.sqrt(jnp.float32(input_dim))
    bound2 = 1.0 / jnp.sqrt(jnp.float32(num_hidden))
    w1 = jax.random.uniform(k1, (input_dim, num_hidden), jnp.float32, -bound1, bound1)
    b1 = jax.random.uniform(k2, (1, num_hidden), jnp.float32, -bound1, bound1)
    w2 = jax.random.uniform(k3, (num_hidden, output_dim), jnp.float32, -bound2, bound2)
    b2 = jax.random.uniform(k4, (1, output_dim), jnp.float32, -bound2, bound2)
    return w1, b1, w2, b2


def netgirl_reference(x, w1, b1, w2, b2):
    h = jnp.tanh(x @ w1 + b1.reshape(1, -1))
    return jnp.tanh(h @ w2 + b2.reshape(1, -1))


if __name__ == "__main__":
    input_dim, num_hidden, output_dim = 16, 32, 8
    batch = 8

    key = jax.random.PRNGKey(0)
    kx, kp = jax.random.split(key)
    x = jax.random.normal(kx, (batch, input_dim), jnp.float32)
    w1, b1, w2, b2 = init_netgirl_params(kp, input_dim, num_hidden, output_dim)

    out = netgirl_forward(x, w1, b1, w2, b2)
    jax.block_until_ready(out)

    ref = netgirl_reference(x, w1, b1, w2, b2)
    assert out.shape == (batch, output_dim)
    # bf16 matmul inputs (f32 accumulation) => loosen tolerance vs. pure-f32 ref.
    assert jnp.allclose(out, ref, atol=3e-2, rtol=3e-2), \
        f"max abs err {jnp.max(jnp.abs(out - ref))}"

    print("KERNEL_OK")
</pallas_src>

<mosaic_0001>
module attributes {stable_mosaic.version = 11 : i64} {
  func.func @_netgirl_kernel(%arg0: i32, %arg1: memref<8x16xf32, #tpu.memory_space<vmem>>, %arg2: memref<16x128xbf16, #tpu.memory_space<vmem>>, %arg3: memref<1x128xf32, #tpu.memory_space<vmem>>, %arg4: memref<128x8xbf16, #tpu.memory_space<vmem>>, %arg5: memref<1x8xf32, #tpu.memory_space<vmem>>, %arg6: memref<8x8xf32, #tpu.memory_space<vmem>>) attributes {dimension_semantics = [#tpu.dimension_semantics<parallel>], iteration_bounds = array<i64: 1>, scalar_prefetch = 0 : i64, scratch_operands = 0 : i64, tpu.core_type = #tpu.core_type<tc>, window_params = [{transform_indices = @transform_0, window_bounds = array<i64: 8, 16>}, {pipeline_mode = #tpu.pipeline_mode<synchronous>, transform_indices = @transform_1, window_bounds = array<i64: 16, 128>}, {pipeline_mode = #tpu.pipeline_mode<synchronous>, transform_indices = @transform_2, window_bounds = array<i64: 1, 128>}, {pipeline_mode = #tpu.pipeline_mode<synchronous>, transform_indices = @transform_3, window_bounds = array<i64: 128, 8>}, {pipeline_mode = #tpu.pipeline_mode<synchronous>, transform_indices = @transform_4, window_bounds = array<i64: 1, 8>}, {transform_indices = @transform_5, window_bounds = array<i64: 8, 8>}]} {
    %c0 = arith.constant 0 : index
    %c0_0 = arith.constant 0 : index
    %0 = vector.load %arg1[%c0, %c0_0] : memref<8x16xf32, #tpu.memory_space<vmem>>, vector<8x16xf32>
    %1 = arith.truncf %0 : vector<8x16xf32> to vector<8x16xbf16>
    %c0_1 = arith.constant 0 : index
    %c0_2 = arith.constant 0 : index
    %2 = vector.load %arg2[%c0_1, %c0_2] : memref<16x128xbf16, #tpu.memory_space<vmem>>, vector<16x128xbf16>
    %cst = arith.constant dense<0.000000e+00> : vector<8x128xf32>
    %3 = tpu.matmul %1, %2, %cst {dimension_numbers = #tpu.dot_dimension_numbers<[1], [0], [0], [1], [0, 0, 1, 1], [], []>} : vector<8x16xbf16>, vector<16x128xbf16>, vector<8x128xf32> -> vector<8x128xf32>
    %c0_3 = arith.constant 0 : index
    %c0_4 = arith.constant 0 : index
    %4 = vector.load %arg3[%c0_3, %c0_4] : memref<1x128xf32, #tpu.memory_space<vmem>>, vector<1x128xf32>
    %5 = vector.broadcast %4 : vector<1x128xf32> to vector<8x128xf32>
    %6 = arith.addf %3, %5 : vector<8x128xf32>
    %7 = arith.truncf %6 : vector<8x128xf32> to vector<8x128xbf16>
    %8 = math.tanh %7 : vector<8x128xbf16>
    %c0_5 = arith.constant 0 : index
    %c0_6 = arith.constant 0 : index
    %9 = vector.load %arg4[%c0_5, %c0_6] : memref<128x8xbf16, #tpu.memory_space<vmem>>, vector<128x8xbf16>
    %cst_7 = arith.constant dense<0.000000e+00> : vector<8x8xf32>
    %10 = tpu.matmul %8, %9, %cst_7 {dimension_numbers = #tpu.dot_dimension_numbers<[1], [0], [0], [1], [0, 0, 1, 1], [], []>} : vector<8x128xbf16>, vector<128x8xbf16>, vector<8x8xf32> -> vector<8x8xf32>
    %c0_8 = arith.constant 0 : index
    %c0_9 = arith.constant 0 : index
    %11 = vector.load %arg5[%c0_8, %c0_9] : memref<1x8xf32, #tpu.memory_space<vmem>>, vector<1x8xf32>
    %12 = vector.broadcast %11 : vector<1x8xf32> to vector<8x8xf32>
    %13 = arith.addf %10, %12 : vector<8x8xf32>
    %14 = math.tanh %13 : vector<8x8xf32>
    %c0_10 = arith.constant 0 : index
    %c0_11 = arith.constant 0 : index
    %15 = vector.load %arg6[%c0_10, %c0_11] : memref<8x8xf32, #tpu.memory_space<vmem>>, vector<8x8xf32>
    tpu.vector_store %arg6[%c0_10, %c0_11], %14 {strides = array<i32>} : memref<8x8xf32, #tpu.memory_space<vmem>>, vector<8x8xf32>,
    return
  }
  func.func @transform_0(%arg0: i32) -> (i32, i32) {
    %c0_i32 = arith.constant 0 : i32
    %c0_i32_0 = arith.constant 0 : i32
    return %arg0, %c0_i32 : i32, i32
  }
  func.func @transform_1(%arg0: i32) -> (i32, i32) {
    %c0_i32 = arith.constant 0 : i32
    %c0_i32_0 = arith.constant 0 : i32
    %c0_i32_1 = arith.constant 0 : i32
    return %c0_i32, %c0_i32_0 : i32, i32
  }
  func.func @transform_2(%arg0: i32) -> (i32, i32) {
    %c0_i32 = arith.constant 0 : i32
    %c0_i32_0 = arith.constant 0 : i32
    %c0_i32_1 = arith.constant 0 : i32
    return %c0_i32, %c0_i32_0 : i32, i32
  }
  func.func @transform_3(%arg0: i32) -> (i32, i32) {
    %c0_i32 = arith.constant 0 : i32
    %c0_i32_0 = arith.constant 0 : i32
    %c0_i32_1 = arith.constant 0 : i32
    return %c0_i32, %c0_i32_0 : i32, i32
  }
  func.func @transform_4(%arg0: i32) -> (i32, i32) {
    %c0_i32 = arith.constant 0 : i32
    %c0_i32_0 = arith.constant 0 : i32
    %c0_i32_1 = arith.constant 0 : i32
    return %c0_i32, %c0_i32_0 : i32, i32
  }
  func.func @transform_5(%arg0: i32) -> (i32, i32) {
    %c0_i32 = arith.constant 0 : i32
    %c0_i32_0 = arith.constant 0 : i32
    return %arg0, %c0_i32 : i32, i32
  }
}

module attributes {stable_mosaic.version = 11 : i64} {
  func.func @_netgirl_kernel(%arg0: i32, %arg1: memref<8x16xf32, #tpu.memory_space<vmem>>, %arg2: memref<16x128xbf16, #tpu.memory_space<vmem>>, %arg3: memref<1x128xf32, #tpu.memory_space<vmem>>, %arg4: memref<128x8xbf16, #tpu.memory_space<vmem>>, %arg5: memref<1x8xf32, #tpu.memory_space<vmem>>, %arg6: memref<8x8xf32, #tpu.memory_space<vmem>>) attributes {dimension_semantics = [#tpu.dimension_semantics<parallel>], iteration_bounds = array<i64: 1>, scalar_prefetch = 0 : i64, scratch_operands = 0 : i64, tpu.core_type = #tpu.core_type<tc>, window_params = [{transform_indices = @transform_0, window_bounds = array<i64: 8, 16>}, {pipeline_mode = #tpu.pipeline_mode<synchronous>, transform_indices = @transform_1, window_bounds = array<i64: 16, 128>}, {pipeline_mode = #tpu.pipeline_mode<synchronous>, transform_indices = @transform_2, window_bounds = array<i64: 1, 128>}, {pipeline_mode = #tpu.pipeline_mode<synchronous>, transform_indices = @transform_3, window_bounds = array<i64: 128, 8>}, {pipeline_mode = #tpu.pipeline_mode<synchronous>, transform_indices = @transform_4, window_bounds = array<i64: 1, 8>}, {transform_indices = @transform_5, window_bounds = array<i64: 8, 8>}]} {
    %c0 = arith.constant 0 : index
    %c0_0 = arith.constant 0 : index
    %0 = vector.load %arg1[%c0, %c0_0] : memref<8x16xf32, #tpu.memory_space<vmem>>, vector<8x16xf32>
    %1 = arith.truncf %0 : vector<8x16xf32> to vector<8x16xbf16>
    %c0_1 = arith.constant 0 : index
    %c0_2 = arith.constant 0 : index
    %2 = vector.load %arg2[%c0_1, %c0_2] : memref<16x128xbf16, #tpu.memory_space<vmem>>, vector<16x128xbf16>
    %cst = arith.constant dense<0.000000e+00> : vector<8x128xf32>
    %3 = tpu.matmul %1, %2, %cst {dimension_numbers = #tpu.dot_dimension_numbers<[1], [0], [0], [1], [0, 0, 1, 1], [], []>} : vector<8x16xbf16>, vector<16x128xbf16>, vector<8x128xf32> -> vector<8x128xf32>
    %c0_3 = arith.constant 0 : index
    %c0_4 = arith.constant 0 : index
    %4 = vector.load %arg3[%c0_3, %c0_4] : memref<1x128xf32, #tpu.memory_space<vmem>>, vector<1x128xf32>
    %5 = vector.broadcast %4 : vector<1x128xf32> to vector<8x128xf32>
    %6 = arith.addf %3, %5 : vector<8x128xf32>
    %7 = arith.truncf %6 : vector<8x128xf32> to vector<8x128xbf16>
    %8 = math.tanh %7 : vector<8x128xbf16>
    %c0_5 = arith.constant 0 : index
    %c0_6 = arith.constant 0 : index
    %9 = vector.load %arg4[%c0_5, %c0_6] : memref<128x8xbf16, #tpu.memory_space<vmem>>, vector<128x8xbf16>
    %cst_7 = arith.constant dense<0.000000e+00> : vector<8x8xf32>
    %10 = tpu.matmul %8, %9, %cst_7 {dimension_numbers = #tpu.dot_dimension_numbers<[1], [0], [0], [1], [0, 0, 1, 1], [], []>} : vector<8x128xbf16>, vector<128x8xbf16>, vector<8x8xf32> -> vector<8x8xf32>
    %c0_8 = arith.constant 0 : index
    %c0_9 = arith.constant 0 : index
    %11 = vector.load %arg5[%c0_8, %c0_9] : memref<1x8xf32, #tpu.memory_space<vmem>>, vector<1x8xf32>
    %12 = vector.broadcast %11 : vector<1x8xf32> to vector<8x8xf32>
    %13 = arith.addf %10, %12 : vector<8x8xf32>
    %14 = math.tanh %13 : vector<8x8xf32>
    %c0_10 = arith.constant 0 : index
    %c0_11 = arith.constant 0 : index
    %15 = vector.load %arg6[%c0_10, %c0_11] : memref<8x8xf32, #tpu.memory_space<vmem>>, vector<8x8xf32>
    tpu.vector_store %arg6[%c0_10, %c0_11], %14 {strides = array<i32>} : memref<8x8xf32, #tpu.memory_space<vmem>>, vector<8x8xf32>,
    return
  }
  func.func @transform_0(%arg0: i32) -> (i32, i32) {
    %c0_i32 = arith.constant 0 : i32
    %c0_i32_0 = arith.constant 0 : i32
    return %arg0, %c0_i32 : i32, i32
  }
  func.func @transform_1(%arg0: i32) -> (i32, i32) {
    %c0_i32 = arith.constant 0 : i32
    %c0_i32_0 = arith.constant 0 : i32
    %c0_i32_1 = arith.constant 0 : i32
    return %c0_i32, %c0_i32_0 : i32, i32
  }
  func.func @transform_2(%arg0: i32) -> (i32, i32) {
    %c0_i32 = arith.constant 0 : i32
    %c0_i32_0 = arith.constant 0 : i32
    %c0_i32_1 = arith.constant 0 : i32
    return %c0_i32, %c0_i32_0 : i32, i32
  }
  func.func @transform_3(%arg0: i32) -> (i32, i32) {
    %c0_i32 = arith.constant 0 : i32
    %c0_i32_0 = arith.constant 0 : i32
    %c0_i32_1 = arith.constant 0 : i32
    return %c0_i32, %c0_i32_0 : i32, i32
  }
  func.func @transform_4(%arg0: i32) -> (i32, i32) {
    %c0_i32 = arith.constant 0 : i32
    %c0_i32_0 = arith.constant 0 : i32
    %c0_i32_1 = arith.constant 0 : i32
    return %c0_i32, %c0_i32_0 : i32, i32
  }
  func.func @transform_5(%arg0: i32) -> (i32, i32) {
    %c0_i32 = arith.constant 0 : i32
    %c0_i32_0 = arith.constant 0 : i32
    return %arg0, %c0_i32 : i32, i32
  }
}

</mosaic_0001>

<bundles_post_ra>
// kernel: tpu_custom_call.1
= control target key start
LH: loop header
LB: loop body
LE: loop exit
PB: predicated region body
PF: predicated region fallthrough
CT: control target
= control target key end

     0   :  { %vm36_vm0 = vcmask 130048   ;;  %s306_s0 = inlined_call_operand.vmem [shape: f32[8,16], index: 0, kind: input, shape index: {}]   ;;  %s307_s1 = inlined_call_operand.vmem [shape: bf16[16,128], index: 1, kind: input, shape index: {}]   ;;  %s308_s2 = inlined_call_operand.vmem [shape: f32[1,128], index: 2, kind: input, shape index: {}]   ;;  %s309_s3 = inlined_call_operand.vmem [shape: bf16[128,8], index: 3, kind: input, shape index: {}]   ;;  %s310_s4 = inlined_call_operand.vmem [shape: f32[1,8], index: 4, kind: input, shape index: {}]   ;;  %s311_s5 = inlined_call_operand.hbm [shape: f32[8,8], index: 5, kind: output, shape index: {}]  }
   0x1   :  { %v194_v0 = vld [vmem:[%s307_s1] sm:$0xff]  ;;  %v202_v2 = vld [vmem:[%s309_s3 + $0x38] sm:$0xff]  ;;  %v201_v4 = vld [vmem:[%s309_s3 + $0x30] sm:$0xff] }
   0x2   :  { %v22_v1 = vld [vmem:[%s306_s0] sm:$0xff]  ;;  %47 = vmatpush.bf16.msra.mxu0 %v194_v0  ;;  %125 = vmatpush.bf16.msra.mxu1 %v202_v2 }
   0x3   :  { %v23_v3 = vpack.c.bf16 %v22_v1, %v22_v1 }
   0x4   :  { %10 = vsyncpa [#allocation3], 0  ;;  %v200_v5 = vld [vmem:[%s309_s3 + $0x28] sm:$0xff]  ;;  %v199_v6 = vld [vmem:[%s309_s3 + $0x20] sm:$0xff]  ;;  %s148_s17 = sshll.u32 %s311_s5, 4  ;;  %vm139_vm1 = vcmask 64512   ;;  %s149_s17 = int_to_ptr.hbm [resolvable:$true] %s148_s17 }
   0x5   :  { %161 = vmatmul.msk.bf16.vlgmr.msra.gmra.mxu0 %vm36_vm0, %v23_v3  ;;  %v198_v7 = vld [vmem:[%s309_s3 + $0x18] sm:$0xff]  ;;  %v197_v8 = vld [vmem:[%s309_s3 + $0x10] sm:$0xff]  ;;  %v196_v9 = vld [vmem:[%s309_s3 + $0x8] sm:$0xff] }
   0x6   :  { %126 = vmatpush.bf16.msra.mxu1 %v201_v4  ;;  %v195_v10 = vld [vmem:[%s309_s3] sm:$0xff]  ;;  %s236_s3 = smov [#allocation2]  }
   0x7   :  { %v204_v11 = vld [vmem:[%s308_s2] ss:$0 sm:$0xff]  ;;  %s146_s15 = sshll.u32 %s236_s3, 4  ;;  %s147_s15 = int_to_ptr.vmem [resolvable:$true] %s146_s15 }
   0x8   :  { %v205_v19 = vld [vmem:[%s310_s4] ss:$0 sm:$0xff] }
   0xa   :  { %127 = vmatpush.bf16.msra.mxu1 %v200_v5 }
   0xe   :  { %128 = vmatpush.bf16.msra.mxu1 %v199_v6 }
  0x12   :  { %129 = vmatpush.bf16.msra.mxu1 %v198_v7 }
  0x16   :  { %130 = vmatpush.bf16.msra.mxu1 %v197_v8 }
  0x1a   :  { %131 = vmatpush.bf16.msra.mxu1 %v196_v9 }
  0x1e   :  { %132 = vmatpush.bf16.msra.mxu1 %v195_v10 }
  0x82   :  { %v49_v12 = vpop.f32.mrf.mxu0 }
  0x83   :  { %v50_v13 = vadd.f32 %v204_v11, %v49_v12 }
  0x85   :  { %v53_v14 = vpack.c.bf16 %v50_v13, %v50_v13 }
  0x87   :  { %v54_v15 = vunpack.c.l.bf16 %v53_v14 }
  0x89   :  { %206 = vtanh.f32 %v54_v15 }
  0x8a   :  { %v51_v16 = vpop.f32.mrf.mxu0 }
  0x8f   :  { %v207_v17 = vpop.eup %206 }
  0x90   :  { %v56_v18 = vpack.c.bf16 %v207_v17, %v207_v17 }
  0x92   :  { %133 = vmatmul.bf16.vlgmr.msra.gmra.mxu1 %v56_v18 }
 0x10f   :  { %v134_v20 = vpop.f32.mrf.mxu1 }
 0x110   :  { %v135_v21 = vadd.f32 %v205_v19, %v134_v20 }
 0x112   :  { %208 = vtanh.f32 %v135_v21 }
 0x117   :  { %v136_v22 = vpop.f32.mrf.mxu1 }
 0x118   :  { %v209_v23 = vpop.eup %208 }
 0x119   :  { %140 = vst.msk [vmem:[#allocation2] sm:$0xff] %vm139_vm1, %v209_v23 }
 0x11a   :  { %151 = dma.vmem_to_hbm [thread:$0]  %s147_s15, 128, %s149_s17, [#allocation3]  }
 0x11b   :  { %234 = dma.done.wait [#allocation3], 128  }
 0x11c   :  { %235 = vsyncadd [#allocation3], 4294967168 }
 0x11d   :  { %156 = vsyncpa [#allocation3], 1 }

// kernel: tpu_custom_call.1
= control target key start
LH: loop header
LB: loop body
LE: loop exit
PB: predicated region body
PF: predicated region fallthrough
CT: control target
= control target key end

     0   :  { %vm36_vm0 = vcmask 130048   ;;  %s306_s0 = inlined_call_operand.vmem [shape: f32[8,16], index: 0, kind: input, shape index: {}]   ;;  %s307_s1 = inlined_call_operand.vmem [shape: bf16[16,128], index: 1, kind: input, shape index: {}]   ;;  %s308_s2 = inlined_call_operand.vmem [shape: f32[1,128], index: 2, kind: input, shape index: {}]   ;;  %s309_s3 = inlined_call_operand.vmem [shape: bf16[128,8], index: 3, kind: input, shape index: {}]   ;;  %s310_s4 = inlined_call_operand.vmem [shape: f32[1,8], index: 4, kind: input, shape index: {}]   ;;  %s311_s5 = inlined_call_operand.hbm [shape: f32[8,8], index: 5, kind: output, shape index: {}]  }
   0x1   :  { %v194_v0 = vld [vmem:[%s307_s1] sm:$0xff]  ;;  %v202_v2 = vld [vmem:[%s309_s3 + $0x38] sm:$0xff]  ;;  %v201_v4 = vld [vmem:[%s309_s3 + $0x30] sm:$0xff] }
   0x2   :  { %v22_v1 = vld [vmem:[%s306_s0] sm:$0xff]  ;;  %47 = vmatpush.bf16.msra.mxu0 %v194_v0  ;;  %125 = vmatpush.bf16.msra.mxu1 %v202_v2 }
   0x3   :  { %v23_v3 = vpack.c.bf16 %v22_v1, %v22_v1 }
   0x4   :  { %10 = vsyncpa [#allocation3], 0  ;;  %v200_v5 = vld [vmem:[%s309_s3 + $0x28] sm:$0xff]  ;;  %v199_v6 = vld [vmem:[%s309_s3 + $0x20] sm:$0xff]  ;;  %s148_s17 = sshll.u32 %s311_s5, 4  ;;  %vm139_vm1 = vcmask 64512   ;;  %s149_s17 = int_to_ptr.hbm [resolvable:$true] %s148_s17 }
   0x5   :  { %161 = vmatmul.msk.bf16.vlgmr.msra.gmra.mxu0 %vm36_vm0, %v23_v3  ;;  %v198_v7 = vld [vmem:[%s309_s3 + $0x18] sm:$0xff]  ;;  %v197_v8 = vld [vmem:[%s309_s3 + $0x10] sm:$0xff]  ;;  %v196_v9 = vld [vmem:[%s309_s3 + $0x8] sm:$0xff] }
   0x6   :  { %126 = vmatpush.bf16.msra.mxu1 %v201_v4  ;;  %v195_v10 = vld [vmem:[%s309_s3] sm:$0xff]  ;;  %s236_s3 = smov [#allocation2]  }
   0x7   :  { %v204_v11 = vld [vmem:[%s308_s2] ss:$0 sm:$0xff]  ;;  %s146_s15 = sshll.u32 %s236_s3, 4  ;;  %s147_s15 = int_to_ptr.vmem [resolvable:$true] %s146_s15 }
   0x8   :  { %v205_v19 = vld [vmem:[%s310_s4] ss:$0 sm:$0xff] }
   0xa   :  { %127 = vmatpush.bf16.msra.mxu1 %v200_v5 }
   0xe   :  { %128 = vmatpush.bf16.msra.mxu1 %v199_v6 }
  0x12   :  { %129 = vmatpush.bf16.msra.mxu1 %v198_v7 }
  0x16   :  { %130 = vmatpush.bf16.msra.mxu1 %v197_v8 }
  0x1a   :  { %131 = vmatpush.bf16.msra.mxu1 %v196_v9 }
  0x1e   :  { %132 = vmatpush.bf16.msra.mxu1 %v195_v10 }
  0x82   :  { %v49_v12 = vpop.f32.mrf.mxu0 }
  0x83   :  { %v50_v13 = vadd.f32 %v204_v11, %v49_v12 }
  0x85   :  { %v53_v14 = vpack.c.bf16 %v50_v13, %v50_v13 }
  0x87   :  { %v54_v15 = vunpack.c.l.bf16 %v53_v14 }
  0x89   :  { %206 = vtanh.f32 %v54_v15 }
  0x8a   :  { %v51_v16 = vpop.f32.mrf.mxu0 }
  0x8f   :  { %v207_v17 = vpop.eup %206 }
  0x90   :  { %v56_v18 = vpack.c.bf16 %v207_v17, %v207_v17 }
  0x92   :  { %133 = vmatmul.bf16.vlgmr.msra.gmra.mxu1 %v56_v18 }
 0x10f   :  { %v134_v20 = vpop.f32.mrf.mxu1 }
 0x110   :  { %v135_v21 = vadd.f32 %v205_v19, %v134_v20 }
 0x112   :  { %208 = vtanh.f32 %v135_v21 }
 0x117   :  { %v136_v22 = vpop.f32.mrf.mxu1 }
 0x118   :  { %v209_v23 = vpop.eup %208 }
 0x119   :  { %140 = vst.msk [vmem:[#allocation2] sm:$0xff] %vm139_vm1, %v209_v23 }
 0x11a   :  { %151 = dma.vmem_to_hbm [thread:$0]  %s147_s15, 128, %s149_s17, [#allocation3]  }
 0x11b   :  { %234 = dma.done.wait [#allocation3], 128  }
 0x11c   :  { %235 = vsyncadd [#allocation3], 4294967168 }
 0x11d   :  { %156 = vsyncpa [#allocation3], 1 }

</bundles_post_ra>
